<compile_context>
chip_gen: v6e
topology: v6e:2x2x1
jax: 0.10.0
libtpu: 0.0.40
codegen_flags: <defaults>
</compile_context>

<pallas_src>
import jax
import jax.numpy as jnp
from jax import lax
from jax.experimental import pallas as pl
from jax.experimental.pallas import tpu as pltpu


def _round_up(v, m):
    return (v + m - 1) // m * m


def sae_kernel(x_ref, w_ref, b_ref, o_ref, acc_ref):
    # x_ref:   (tb, Dp)  compute dtype   -- batch tile of the input
    # w_ref:   (tf, Dp)  compute dtype   -- feature tile of W_enc (rows = features);
    #                                       reused for decode since W_dec^T == W_enc
    # b_ref:   (1, tf)   f32             -- feature tile of the encoder bias
    # o_ref:   (tb, Dp)  out dtype       -- reconstruction tile (written on last f step)
    # acc_ref: (tb, Dp)  f32 scratch     -- decode accumulator across feature tiles
    f = pl.program_id(1)

    @pl.when(f == 0)
    def _():
        acc_ref[...] = jnp.zeros_like(acc_ref)

    x = x_ref[...]
    w = w_ref[...]

    # encode: contract the shared input dim (tb, Dp) x (tf, Dp) -> (tb, tf), f32 acc on MXU
    pre = lax.dot_general(x, w, (((1,), (1,)), ((), ())),
                          preferred_element_type=jnp.float32)
    h = jnp.maximum(pre + b_ref[...], 0.0)

    # decode partial sum for this feature tile: (tb, tf) @ (tf, Dp) -> (tb, Dp)
    acc_ref[...] += jnp.dot(h.astype(w.dtype), w,
                            preferred_element_type=jnp.float32)

    @pl.when(f == pl.num_programs(1) - 1)
    def _():
        o_ref[...] = acc_ref[...].astype(o_ref.dtype)


def sae_forward(x, W_enc, bias_enc, W_dec=None, *, tb=None, tf=None,
                compute_dtype=jnp.bfloat16, interpret=False):
    """Fused SAE forward: decode(relu(encode(x))).

    x: (B, D) or (D,).  W_enc: (F, D).  bias_enc: (F,).
    W_dec is accepted for API parity but not DMA'd separately: the module ties
    W_dec = W_enc.T at construction, so the decode matmul reuses the W_enc tile.
    """
    if x.ndim == 1:
        x = x[None, :]
    B, D = x.shape
    F, D2 = W_enc.shape
    assert D2 == D, "W_enc must be (feature_dim, input_dim)"
    out_dtype = x.dtype

    # ---- tile sizes / padding (lane-dense last dim, MXU-sized batch tile) ----
    Dp = _round_up(D, 128)
    if tb is None:
        # 256 fills the v6e/v7x MXU M-dim; use tb=128 on v5e if tuning by hand.
        tb = 256 if B >= 256 else _round_up(B, 8)
    tb = max(8, min(_round_up(tb, 8), _round_up(B, 8)))
    Bp = _round_up(B, tb)
    if tf is None:
        tf = 512 if F >= 512 else _round_up(F, 128)
    tf = max(128, min(_round_up(tf, 128), _round_up(F, 128)))
    Fp = _round_up(F, tf)

    cdtype = jnp.dtype(compute_dtype)
    xp = jnp.pad(x, ((0, Bp - B), (0, Dp - D))).astype(cdtype)
    wp = jnp.pad(W_enc, ((0, Fp - F), (0, Dp - D))).astype(cdtype)
    bp = jnp.pad(bias_enc.astype(jnp.float32), (0, Fp - F))[None, :]  # (1, Fp)

    grid = (Bp // tb, Fp // tf)   # batch axis parallel (megacore), feature axis = reduction, last

    # ---- VMEM budget: double-buffered x / W / bias / out tiles + f32 accumulator ----
    c = cdtype.itemsize
    o = jnp.dtype(out_dtype).itemsize
    block_bytes = (2 * (tb * Dp * c + tf * Dp * c + tf * 4 + tb * Dp * o)
                   + tb * Dp * 4)
    vmem_limit = int(min(max(2 * block_bytes, 32 * 1024 * 1024),
                         64 * 1024 * 1024))

    n_btiles = grid[0]
    cost = pl.CostEstimate(
        flops=int(4 * Bp * Dp * Fp),                     # two matmuls: 2*2*B*D*F
        transcendentals=0,
        bytes_accessed=int(xp.size * c + n_btiles * wp.size * c
                           + n_btiles * bp.size * 4 + Bp * Dp * o),
    )

    out = pl.pallas_call(
        sae_kernel,
        out_shape=jax.ShapeDtypeStruct((Bp, Dp), out_dtype),
        grid_spec=pltpu.PrefetchScalarGridSpec(
            num_scalar_prefetch=0,
            grid=grid,
            in_specs=[
                pl.BlockSpec((tb, Dp), lambda i, f: (i, 0)),   # x batch tile
                pl.BlockSpec((tf, Dp), lambda i, f: (f, 0)),   # W_enc feature tile
                pl.BlockSpec((1, tf), lambda i, f: (0, f)),    # bias feature tile
            ],
            out_specs=pl.BlockSpec((tb, Dp), lambda i, f: (i, 0)),
            scratch_shapes=[pltpu.VMEM((tb, Dp), jnp.float32)],
        ),
        compiler_params=pltpu.CompilerParams(
            dimension_semantics=("parallel", "arbitrary"),
            vmem_limit_bytes=vmem_limit,
        ),
        cost_estimate=cost,
        interpret=interpret,
    )(xp, wp, bp)

    return out[:B, :D]


def init_sae_params(key, input_dim, feature_dim):
    """Mirror the PyTorch module's __init__: W_enc orthogonal (F, D),
    bias_enc ~ U[0,1) (F,), W_dec = W_enc.T."""
    k1, k2 = jax.random.split(key)
    a = jax.random.normal(k1, (feature_dim, input_dim), dtype=jnp.float32)
    if feature_dim >= input_dim:
        q, _ = jnp.linalg.qr(a)            # (F, D), orthonormal columns
        W_enc = q
    else:
        q, _ = jnp.linalg.qr(a.T)          # (D, F), orthonormal columns
        W_enc = q.T
    bias_enc = jax.random.uniform(k2, (feature_dim,), dtype=jnp.float32)
    W_dec = W_enc.T
    return W_enc, bias_enc, W_dec


def sae_reference(x, W_enc, bias_enc, W_dec):
    if x.ndim == 1:
        x = x[None, :]
    h = jax.nn.relu(jnp.einsum('ij,bj->bi', W_enc, x) + bias_enc)
    return jnp.einsum('ij,bj->bi', W_dec, h)


if __name__ == "__main__":
    # Small shapes, deliberately not (8,128)-aligned to exercise the padding path.
    B, input_dim, feature_dim = 8, 96, 320
    key = jax.random.PRNGKey(0)
    kx, kp = jax.random.split(key)

    W_enc, bias_enc, W_dec = init_sae_params(kp, input_dim, feature_dim)
    x = jax.random.normal(kx, (B, input_dim), dtype=jnp.float32)

    ref = sae_reference(x, W_enc, bias_enc, W_dec)

    # f32 compute path: exact check of the fused kernel's math.
    out_f32 = jax.block_until_ready(
        sae_forward(x, W_enc, bias_enc, W_dec, compute_dtype=jnp.float32))
    assert out_f32.shape == (B, input_dim)
    assert jnp.allclose(out_f32, ref, atol=1e-4, rtol=1e-4), "f32 kernel mismatch"

    # Default bf16 (MXU-native) compute path with f32 accumulation: looser tolerance.
    out_bf16 = jax.block_until_ready(sae_forward(x, W_enc, bias_enc, W_dec))
    assert out_bf16.shape == (B, input_dim)
    assert jnp.allclose(out_bf16, ref, atol=5e-2, rtol=5e-2), "bf16 kernel mismatch"

    print("KERNEL_OK")
</pallas_src>

<mosaic_0001>
module attributes {stable_mosaic.version = 11 : i64} {
  func.func @sae_kernel(%arg0: i32, %arg1: i32, %arg2: memref<8x128xf32, #tpu.memory_space<vmem>>, %arg3: memref<384x128xf32, #tpu.memory_space<vmem>>, %arg4: memref<1x384xf32, #tpu.memory_space<vmem>>, %arg5: memref<8x128xf32, #tpu.memory_space<vmem>>, %arg6: memref<8x128xf32, #tpu.memory_space<vmem>>) attributes {dimension_semantics = [#tpu.dimension_semantics<parallel>, #tpu.dimension_semantics<arbitrary>], iteration_bounds = array<i64: 1, 1>, scalar_prefetch = 0 : i64, scratch_operands = 1 : i64, tpu.core_type = #tpu.core_type<tc>, window_params = [{transform_indices = @transform_0, window_bounds = array<i64: 8, 128>}, {transform_indices = @transform_1, window_bounds = array<i64: 384, 128>}, {transform_indices = @transform_2, window_bounds = array<i64: 1, 384>}, {transform_indices = @transform_3, window_bounds = array<i64: 8, 128>}]} {
    %c0_i32 = arith.constant 0 : i32
    %0 = arith.cmpi eq, %arg1, %c0_i32 : i32
    %1 = arith.extui %0 : i1 to i32
    %c0_i32_0 = arith.constant 0 : i32
    %2 = arith.cmpi ne, %1, %c0_i32_0 : i32
    scf.if %2 {
      %cst_14 = arith.constant 0.000000e+00 : f32
      %18 = vector.broadcast %cst_14 : f32 to vector<8x128xf32>
      %c0_15 = arith.constant 0 : index
      %c0_16 = arith.constant 0 : index
      %19 = vector.load %arg6[%c0_15, %c0_16] : memref<8x128xf32, #tpu.memory_space<vmem>>, vector<8x128xf32>
      tpu.vector_store %arg6[%c0_15, %c0_16], %18 {strides = array<i32>} : memref<8x128xf32, #tpu.memory_space<vmem>>, vector<8x128xf32>,
    } else {
    }
    %c0 = arith.constant 0 : index
    %c0_1 = arith.constant 0 : index
    %3 = vector.load %arg2[%c0, %c0_1] : memref<8x128xf32, #tpu.memory_space<vmem>>, vector<8x128xf32>
    %c0_2 = arith.constant 0 : index
    %c0_3 = arith.constant 0 : index
    %4 = vector.load %arg3[%c0_2, %c0_3] : memref<384x128xf32, #tpu.memory_space<vmem>>, vector<384x128xf32>
    %cst = arith.constant dense<0.000000e+00> : vector<8x384xf32>
    %5 = tpu.matmul %3, %4, %cst {dimension_numbers = #tpu.dot_dimension_numbers<[1], [1], [0], [0], [0, 0, 1, 0], [], []>} : vector<8x128xf32>, vector<384x128xf32>, vector<8x384xf32> -> vector<8x384xf32>
    %c0_4 = arith.constant 0 : index
    %c0_5 = arith.constant 0 : index
    %6 = vector.load %arg4[%c0_4, %c0_5] : memref<1x384xf32, #tpu.memory_space<vmem>>, vector<1x384xf32>
    %7 = vector.broadcast %6 : vector<1x384xf32> to vector<8x384xf32>
    %8 = arith.addf %5, %7 : vector<8x384xf32>
    %cst_6 = arith.constant 0.000000e+00 : f32
    %9 = vector.broadcast %cst_6 : f32 to vector<8x384xf32>
    %10 = arith.maximumf %8, %9 : vector<8x384xf32>
    %c0_7 = arith.constant 0 : index
    %c0_8 = arith.constant 0 : index
    %11 = vector.load %arg6[%c0_7, %c0_8] : memref<8x128xf32, #tpu.memory_space<vmem>>, vector<8x128xf32>
    %cst_9 = arith.constant dense<0.000000e+00> : vector<8x128xf32>
    %12 = tpu.matmul %10, %4, %cst_9 {dimension_numbers = #tpu.dot_dimension_numbers<[1], [0], [0], [1], [0, 0, 1, 1], [], []>} : vector<8x384xf32>, vector<384x128xf32>, vector<8x128xf32> -> vector<8x128xf32>
    %13 = arith.addf %11, %12 : vector<8x128xf32>
    %c0_10 = arith.constant 0 : index
    %c0_11 = arith.constant 0 : index
    %14 = vector.load %arg6[%c0_10, %c0_11] : memref<8x128xf32, #tpu.memory_space<vmem>>, vector<8x128xf32>
    tpu.vector_store %arg6[%c0_10, %c0_11], %13 {strides = array<i32>} : memref<8x128xf32, #tpu.memory_space<vmem>>, vector<8x128xf32>,
    %c0_i32_12 = arith.constant 0 : i32
    %15 = arith.cmpi eq, %arg1, %c0_i32_12 : i32
    %16 = arith.extui %15 : i1 to i32
    %c0_i32_13 = arith.constant 0 : i32
    %17 = arith.cmpi ne, %16, %c0_i32_13 : i32
    scf.if %17 {
      %c0_14 = arith.constant 0 : index
      %c0_15 = arith.constant 0 : index
      %18 = vector.load %arg6[%c0_14, %c0_15] : memref<8x128xf32, #tpu.memory_space<vmem>>, vector<8x128xf32>
      %c0_16 = arith.constant 0 : index
      %c0_17 = arith.constant 0 : index
      %19 = vector.load %arg5[%c0_16, %c0_17] : memref<8x128xf32, #tpu.memory_space<vmem>>, vector<8x128xf32>
      tpu.vector_store %arg5[%c0_16, %c0_17], %18 {strides = array<i32>} : memref<8x128xf32, #tpu.memory_space<vmem>>, vector<8x128xf32>,
    } else {
    }
    return
  }
  func.func @transform_0(%arg0: i32, %arg1: i32) -> (i32, i32) {
    %c0_i32 = arith.constant 0 : i32
    %c0_i32_0 = arith.constant 0 : i32
    return %arg0, %c0_i32 : i32, i32
  }
  func.func @transform_1(%arg0: i32, %arg1: i32) -> (i32, i32) {
    %c0_i32 = arith.constant 0 : i32
    %c0_i32_0 = arith.constant 0 : i32
    return %arg1, %c0_i32 : i32, i32
  }
  func.func @transform_2(%arg0: i32, %arg1: i32) -> (i32, i32) {
    %c0_i32 = arith.constant 0 : i32
    %c0_i32_0 = arith.constant 0 : i32
    return %c0_i32, %arg1 : i32, i32
  }
  func.func @transform_3(%arg0: i32, %arg1: i32) -> (i32, i32) {
    %c0_i32 = arith.constant 0 : i32
    %c0_i32_0 = arith.constant 0 : i32
    return %arg0, %c0_i32 : i32, i32
  }
}

</mosaic_0001>

<bundles_post_ra>
// kernel: tpu_custom_call.1
= control target key start
LH: loop header
LB: loop body
LE: loop exit
PB: predicated region body
PF: predicated region fallthrough
CT: control target
= control target key end

     0   :  { %8 = vsyncpa [#allocation4], 0  ;;  %s938_s0 = inlined_call_operand.hbm [shape: f32[8,128], index: 0, kind: input, shape index: {}]   ;;  %s939_s1 = inlined_call_operand.hbm [shape: f32[384,128], index: 1, kind: input, shape index: {}]   ;;  %s940_s2 = inlined_call_operand.vmem [shape: f32[1,384], index: 2, kind: input, shape index: {}]   ;;  %s941_s3 = inlined_call_operand.hbm [shape: f32[8,128], index: 3, kind: output, shape index: {}]  }
   0x1   :  { %9 = vsyncpa [#allocation7], 0 }
   0x2   :  { %10 = vsyncpa [#allocation5], 0  ;;  %s666_s12 = smov [#allocation3]   ;;  %s667_s14 = smov [#allocation6]  }
   0x3   :  { %s17_s13 = sshll.u32 %s666_s12, 4  ;;  %s26_s15 = sshll.u32 %s667_s14, 4  ;;  %s18_s13 = int_to_ptr.vmem [resolvable:$true] %s17_s13  ;;  %s27_s15 = int_to_ptr.vmem [resolvable:$true] %s26_s15 }
   0x4   :  { %s608_s16 = scalar_lea.vmem %s18_s13, 128  ;;  %p613_p1 = scmp.lt.s32.totalorder %s18_s13, %s18_s13 }
   0x5   :  { %p609_p0 = scmp.ne.s32.totalorder %s18_s13, %s608_s16  ;;  %p614_p2 = scmp.lt.s32.totalorder %s608_s16, %s608_s16 }
   0x7   :  { %p615_p3 = por %p614_p2, %p613_p1 }
   0x9   :  { %p616_p4 = pnand %p615_p3, %p609_p0 }
   0xb   :  { %619 = shalt.err (!%p616_p4)
}
   0xc   :  { %20 = dma.hbm_to_vmem [thread:$0]  %s938_s0, 128, %s18_s13, [#allocation4]  }
   0xd   :  { %s628_s19 = scalar_lea.vmem %s27_s15, 6144  ;;  %p633_p6 = scmp.lt.s32.totalorder %s27_s15, %s27_s15 }
   0xe   :  { %p629_p5 = scmp.ne.s32.totalorder %s27_s15, %s628_s19  ;;  %p634_p7 = scmp.lt.s32.totalorder %s628_s19, %s628_s19 }
  0x10   :  { %p635_p8 = por %p634_p7, %p633_p6 }
  0x12   :  { %p636_p9 = pnand %p635_p8, %p629_p5 }
  0x14   :  { %639 = shalt.err (!%p636_p9)
}
  0x15   :  { %s668_s20 = smov 128   ;;  %s669_s21 = smov 8  }
  0x16   :  { %32 = dma.hbm_to_vmem [thread:$0]  %s939_s1, 6144, %s27_s15, [#allocation7], %s668_s20, %s668_s20, %s669_s21  }
  0x17   :  { %660 = dma.done.wait [#allocation4], 128  }
  0x18   :  { %661 = vsyncadd [#allocation4], 4294967168 }
  0x19   :  { %662 = dma.done.wait [#allocation7], 6144  }
  0x1a   :  { %663 = vsyncadd [#allocation7], 4294961152  ;;  %v670_v0 = vmov 0.0   ;;  %vm671_vm0 = vmmov 0   ;;  %v702_v1 = vld [vmem:[#allocation6 + $0xf8] sm:$0xff]  ;;  %v706_v3 = vld [vmem:[#allocation6 + $0xf0] sm:$0xff]  ;;  %v97_v50 = vlaneseq }
  0x1b   :  { %523 = vmatprep.subr.mxu1 %v670_v0  ;;  %555 = vmatprep.mubr.msk.f32.mxu1 %vm671_vm0, %v670_v0  ;;  %v704_v2 = vld [vmem:[#allocation6 + $0x78] sm:$0xff]  ;;  %v714_v5 = vld [vmem:[#allocation6 + $0x70] sm:$0xff]  ;;  %v719_v7 = vld [vmem:[#allocation6 + $0xe8] sm:$0xff] }
  0x1c   :  { %420 = vmatprep.subr.mxu0 %v702_v1  ;;  %v709_v4 = vld [vmem:[#allocation6 + $0x178] sm:$0xff]  ;;  %v717_v6 = vld [vmem:[#allocation6 + $0x170] sm:$0xff]  ;;  %v724_v8 = vld [vmem:[#allocation6 + $0x68] sm:$0xff]  ;;  %v98_v51 = vshrl.u32 %v97_v50, 7 }
  0x1d   :  { %421 = vmatpush3.xpose.msra.mxu0 %v704_v2  ;;  %524 = vmatpush3.xpose.msra.mxu1 %v709_v4  ;;  %v727_v9 = vld [vmem:[#allocation6 + $0x168] sm:$0xff]  ;;  %v729_v10 = vld [vmem:[#allocation6 + $0xe0] sm:$0xff]  ;;  %v739_v13 = vld [vmem:[#allocation6 + $0xd8] sm:$0xff] }
  0x1e   :  { %422 = vmatprep.subr.mxu0 %v706_v3  ;;  %525 = vmatprep.subr.mxu1 %v670_v0  ;;  %v734_v11 = vld [vmem:[#allocation6 + $0x60] sm:$0xff]  ;;  %v744_v14 = vld [vmem:[#allocation6 + $0x58] sm:$0xff]  ;;  %v751_v17 = vld [vmem:[#allocation6 + $0xd0] sm:$0xff]  ;;  %v107_v52 = vsub.s32 2, %v98_v51  ;;  %v99_v53 = vsub.s32 0, %v98_v51  ;;  %v103_v55 = vsub.s32 1, %v98_v51 }
  0x1f   :  { %v737_v12 = vld [vmem:[#allocation6 + $0x160] sm:$0xff]  ;;  %v747_v15 = vld [vmem:[#allocation6 + $0x158] sm:$0xff]  ;;  %v757_v18 = vld [vmem:[#allocation6 + $0x50] sm:$0xff] }
  0x20   :  { %v749_v16 = vld [vmem:[#allocation3] sm:$0xff]  ;;  %v760_v19 = vld [vmem:[#allocation6 + $0x150] sm:$0xff]  ;;  %v762_v20 = vld [vmem:[#allocation6 + $0xc8] sm:$0xff] }
  0x21   :  { %423 = vmatpush3.xpose.msra.mxu0 %v714_v5  ;;  %526 = vmatpush3.xpose.msra.mxu1 %v717_v6  ;;  %v767_v21 = vld [vmem:[#allocation6 + $0x48] sm:$0xff]  ;;  %v772_v23 = vld [vmem:[#allocation6 + $0xc0] sm:$0xff]  ;;  %v782_v26 = vld [vmem:[#allocation6 + $0xb8] sm:$0xff] }
  0x22   :  { %424 = vmatprep.subr.mxu0 %v719_v7  ;;  %527 = vmatprep.subr.mxu1 %v670_v0  ;;  %v770_v22 = vld [vmem:[#allocation6 + $0x148] sm:$0xff]  ;;  %v777_v24 = vld [vmem:[#allocation6 + $0x40] sm:$0xff]  ;;  %v787_v27 = vld [vmem:[#allocation6 + $0x38] sm:$0xff] }
  0x23   :  { %452 = vmatprep.mubr.f32.mxu0 %v749_v16  ;;  %v780_v25 = vld [vmem:[#allocation6 + $0x140] sm:$0xff]  ;;  %v790_v28 = vld [vmem:[#allocation6 + $0x138] sm:$0xff]  ;;  %v792_v29 = vld [vmem:[#allocation6 + $0xb0] sm:$0xff] }
  0x24   :  { %v797_v30 = vld [vmem:[#allocation6 + $0x30] sm:$0xff]  ;;  %v802_v32 = vld [vmem:[#allocation6 + $0xa8] sm:$0xff]  ;;  %v812_v35 = vld [vmem:[#allocation6 + $0xa0] sm:$0xff] }
  0x25   :  { %425 = vmatpush3.xpose.msra.mxu0 %v724_v8  ;;  %528 = vmatpush3.xpose.msra.mxu1 %v727_v9  ;;  %v800_v31 = vld [vmem:[#allocation6 + $0x130] sm:$0xff]  ;;  %v807_v33 = vld [vmem:[#allocation6 + $0x28] sm:$0xff]  ;;  %v817_v36 = vld [vmem:[#allocation6 + $0x20] sm:$0xff] }
  0x26   :  { %426 = vmatprep.subr.mxu0 %v729_v10  ;;  %529 = vmatprep.subr.mxu1 %v670_v0  ;;  %v810_v34 = vld [vmem:[#allocation6 + $0x128] sm:$0xff]  ;;  %v820_v37 = vld [vmem:[#allocation6 + $0x120] sm:$0xff]  ;;  %v822_v38 = vld [vmem:[#allocation6 + $0x98] sm:$0xff] }
  0x27   :  { %v827_v39 = vld [vmem:[#allocation6 + $0x18] sm:$0xff]  ;;  %v832_v41 = vld [vmem:[#allocation6 + $0x90] sm:$0xff]  ;;  %v842_v44 = vld [vmem:[#allocation6 + $0x88] sm:$0xff] }
  0x28   :  { %v830_v40 = vld [vmem:[#allocation6 + $0x118] sm:$0xff]  ;;  %v837_v42 = vld [vmem:[#allocation6 + $0x10] sm:$0xff]  ;;  %v847_v45 = vld [vmem:[#allocation6 + $0x8] sm:$0xff] }
  0x29   :  { %427 = vmatpush3.xpose.msra.mxu0 %v734_v11  ;;  %530 = vmatpush3.xpose.msra.mxu1 %v737_v12  ;;  %v840_v43 = vld [vmem:[#allocation6 + $0x110] sm:$0xff]  ;;  %v850_v46 = vld [vmem:[#allocation6 + $0x108] sm:$0xff]  ;;  %v852_v47 = vld [vmem:[#allocation6 + $0x80] sm:$0xff] }
  0x2a   :  { %428 = vmatprep.subr.mxu0 %v739_v13  ;;  %531 = vmatprep.subr.mxu1 %v670_v0  ;;  %v857_v48 = vld [vmem:[#allocation6] sm:$0xff]  ;;  %v95_v54 = vld [vmem:[%s940_s2] sm:$0x7]  ;;  %s672_s2 = smov [#allocation8]  }
  0x2b   :  { %v860_v49 = vld [vmem:[#allocation6 + $0x100] sm:$0xff]  ;;  %v108_v56 = vrot.slane %v95_v54, %v107_v52  ;;  %v100_v57 = vrot.slane %v95_v54, %v99_v53  ;;  %v104_v58 = vrot.slane %v95_v54, %v103_v55  ;;  %s410_s24 = sshll.u32 %s672_s2, 4  ;;  %s411_s24 = int_to_ptr.vmem [resolvable:$true] %s410_s24 }
  0x2c   :  { %s640_s25 = scalar_lea.vmem %s411_s24, 128  ;;  %p645_p11 = scmp.lt.s32.totalorder %s411_s24, %s411_s24 }
  0x2d   :  { %429 = vmatpush3.xpose.msra.mxu0 %v744_v14  ;;  %532 = vmatpush3.xpose.msra.mxu1 %v747_v15  ;;  %p641_p10 = scmp.ne.s32.totalorder %s411_s24, %s640_s25  ;;  %p646_p12 = scmp.lt.s32.totalorder %s640_s25, %s640_s25 }
  0x2e   :  { %430 = vmatprep.subr.mxu0 %v751_v17  ;;  %533 = vmatprep.subr.mxu1 %v670_v0 }
  0x2f   :  { %p647_p13 = por %p646_p12, %p645_p11 }
  0x31   :  { %431 = vmatpush3.xpose.msra.mxu0 %v757_v18  ;;  %534 = vmatpush3.xpose.msra.mxu1 %v760_v19  ;;  %p648_p0 = pnand %p647_p13, %p641_p10 }
  0x32   :  { %432 = vmatprep.subr.mxu0 %v762_v20  ;;  %535 = vmatprep.subr.mxu1 %v670_v0 }
  0x35   :  { %433 = vmatpush3.xpose.msra.mxu0 %v767_v21  ;;  %536 = vmatpush3.xpose.msra.mxu1 %v770_v22 }
  0x36   :  { %434 = vmatprep.subr.mxu0 %v772_v23  ;;  %537 = vmatprep.subr.mxu1 %v670_v0 }
  0x39   :  { %435 = vmatpush3.xpose.msra.mxu0 %v777_v24  ;;  %538 = vmatpush3.xpose.msra.mxu1 %v780_v25 }
  0x3a   :  { %436 = vmatprep.subr.mxu0 %v782_v26  ;;  %539 = vmatprep.subr.mxu1 %v670_v0 }
  0x3d   :  { %437 = vmatpush3.xpose.msra.mxu0 %v787_v27  ;;  %540 = vmatpush3.xpose.msra.mxu1 %v790_v28 }
  0x3e   :  { %438 = vmatprep.subr.mxu0 %v792_v29  ;;  %541 = vmatprep.subr.mxu1 %v670_v0 }
  0x41   :  { %439 = vmatpush3.xpose.msra.mxu0 %v797_v30  ;;  %542 = vmatpush3.xpose.msra.mxu1 %v800_v31 }
  0x42   :  { %440 = vmatprep.subr.mxu0 %v802_v32  ;;  %543 = vmatprep.subr.mxu1 %v670_v0 }
  0x45   :  { %441 = vmatpush3.xpose.msra.mxu0 %v807_v33  ;;  %544 = vmatpush3.xpose.msra.mxu1 %v810_v34 }
  0x46   :  { %442 = vmatprep.subr.mxu0 %v812_v35  ;;  %545 = vmatprep.subr.mxu1 %v670_v0 }
  0x49   :  { %443 = vmatpush3.xpose.msra.mxu0 %v817_v36  ;;  %546 = vmatpush3.xpose.msra.mxu1 %v820_v37 }
  0x4a   :  { %444 = vmatprep.subr.mxu0 %v822_v38  ;;  %547 = vmatprep.subr.mxu1 %v670_v0 }
  0x4d   :  { %445 = vmatpush3.xpose.msra.mxu0 %v827_v39  ;;  %548 = vmatpush3.xpose.msra.mxu1 %v830_v40 }
  0x4e   :  { %446 = vmatprep.subr.mxu0 %v832_v41  ;;  %549 = vmatprep.subr.mxu1 %v670_v0 }
  0x51   :  { %447 = vmatpush3.xpose.msra.mxu0 %v837_v42  ;;  %550 = vmatpush3.xpose.msra.mxu1 %v840_v43 }
  0x52   :  { %448 = vmatprep.subr.mxu0 %v842_v44  ;;  %551 = vmatprep.subr.mxu1 %v670_v0 }
  0x55   :  { %449 = vmatpush3.xpose.msra.mxu0 %v847_v45  ;;  %552 = vmatpush3.xpose.msra.mxu1 %v850_v46 }
  0x56   :  { %450 = vmatprep.subr.mxu0 %v852_v47  ;;  %553 = vmatprep.subr.mxu1 %v670_v0 }
  0x59   :  { %451 = vmatpush3.xpose.msra.mxu0 %v857_v48  ;;  %554 = vmatpush3.xpose.msra.mxu1 %v860_v49 }
  0x5a   :  { %471 = vmatprep.subr.mxu0 %v702_v1  ;;  %558 = vmatprep.subr.mxu1 %v670_v0 }
  0x5c   :  { %453 = vmatmul.mubr.f32.vlgmr.msra.gmra.mxu0 %v749_v16  ;;  %556 = vmatmul.mubr.f32.vlgmr.msra.gmra.mxu1 %v749_v16 }
  0x5d   :  { %472 = vmatpush3.msra.mxu0 %v704_v2  ;;  %559 = vmatpush3.msra.mxu1 %v709_v4 }
  0x5e   :  { %473 = vmatprep.subr.mxu0 %v706_v3  ;;  %560 = vmatprep.subr.mxu1 %v670_v0 }
  0x5f   :  { %474 = vmatpush3.msra.mxu0 %v714_v5  ;;  %561 = vmatpush3.msra.mxu1 %v717_v6 }
  0x60   :  { %475 = vmatprep.subr.mxu0 %v719_v7  ;;  %562 = vmatprep.subr.mxu1 %v670_v0 }
  0x61   :  { %476 = vmatpush3.msra.mxu0 %v724_v8  ;;  %563 = vmatpush3.msra.mxu1 %v727_v9 }
  0x62   :  { %477 = vmatprep.subr.mxu0 %v729_v10  ;;  %564 = vmatprep.subr.mxu1 %v670_v0 }
  0x63   :  { %478 = vmatpush3.msra.mxu0 %v734_v11  ;;  %565 = vmatpush3.msra.mxu1 %v737_v12 }
  0x64   :  { %479 = vmatprep.subr.mxu0 %v739_v13  ;;  %566 = vmatprep.subr.mxu1 %v670_v0 }
  0x65   :  { %480 = vmatpush3.msra.mxu0 %v744_v14  ;;  %567 = vmatpush3.msra.mxu1 %v747_v15 }
  0x66   :  { %481 = vmatprep.subr.mxu0 %v751_v17  ;;  %568 = vmatprep.subr.mxu1 %v670_v0 }
  0x67   :  { %482 = vmatpush3.msra.mxu0 %v757_v18  ;;  %569 = vmatpush3.msra.mxu1 %v760_v19 }
  0x68   :  { %483 = vmatprep.subr.mxu0 %v762_v20  ;;  %570 = vmatprep.subr.mxu1 %v670_v0 }
  0x69   :  { %484 = vmatpush3.msra.mxu0 %v767_v21  ;;  %571 = vmatpush3.msra.mxu1 %v770_v22 }
  0x6a   :  { %485 = vmatprep.subr.mxu0 %v772_v23  ;;  %572 = vmatprep.subr.mxu1 %v670_v0 }
  0x6b   :  { %486 = vmatpush3.msra.mxu0 %v777_v24  ;;  %573 = vmatpush3.msra.mxu1 %v780_v25 }
  0x6c   :  { %487 = vmatprep.subr.mxu0 %v782_v26  ;;  %574 = vmatprep.subr.mxu1 %v670_v0 }
  0x6d   :  { %488 = vmatpush3.msra.mxu0 %v787_v27  ;;  %575 = vmatpush3.msra.mxu1 %v790_v28 }
  0x6e   :  { %489 = vmatprep.subr.mxu0 %v792_v29  ;;  %576 = vmatprep.subr.mxu1 %v670_v0 }
  0x6f   :  { %490 = vmatpush3.msra.mxu0 %v797_v30  ;;  %577 = vmatpush3.msra.mxu1 %v800_v31 }
  0x70   :  { %491 = vmatprep.subr.mxu0 %v802_v32  ;;  %578 = vmatprep.subr.mxu1 %v670_v0 }
  0x71   :  { %492 = vmatpush3.msra.mxu0 %v807_v33  ;;  %579 = vmatpush3.msra.mxu1 %v810_v34 }
  0x72   :  { %493 = vmatprep.subr.mxu0 %v812_v35  ;;  %580 = vmatprep.subr.mxu1 %v670_v0 }
  0x73   :  { %494 = vmatpush3.msra.mxu0 %v817_v36  ;;  %581 = vmatpush3.msra.mxu1 %v820_v37 }
  0x74   :  { %495 = vmatprep.subr.mxu0 %v822_v38  ;;  %582 = vmatprep.subr.mxu1 %v670_v0 }
  0x75   :  { %496 = vmatpush3.msra.mxu0 %v827_v39  ;;  %583 = vmatpush3.msra.mxu1 %v830_v40 }
  0x76   :  { %497 = vmatprep.subr.mxu0 %v832_v41  ;;  %584 = vmatprep.subr.mxu1 %v670_v0 }
  0x77   :  { %498 = vmatpush3.msra.mxu0 %v837_v42  ;;  %585 = vmatpush3.msra.mxu1 %v840_v43 }
  0x78   :  { %499 = vmatprep.subr.mxu0 %v842_v44  ;;  %586 = vmatprep.subr.mxu1 %v670_v0 }
  0x79   :  { %500 = vmatpush3.msra.mxu0 %v847_v45  ;;  %587 = vmatpush3.msra.mxu1 %v850_v46 }
  0x7a   :  { %501 = vmatprep.subr.mxu0 %v852_v47  ;;  %588 = vmatprep.subr.mxu1 %v670_v0 }
  0x7b   :  { %502 = vmatpush3.msra.mxu0 %v857_v48  ;;  %589 = vmatpush3.msra.mxu1 %v860_v49 }
  0x7c   :  { %590 = vmatprep.mubr.msk.f32.mxu1 %vm671_vm0, %v670_v0 }
 0x11c   :  { %v178_v59 = vpop.f32.mrf.mxu0  ;;  %v249_v60 = vpop.f32.mrf.mxu1 }
 0x11d   :  { %v250_v61 = vadd.f32 %v249_v60, %v108_v56  ;;  %v179_v62 = vadd.f32 %v178_v59, %v100_v57 }
 0x11e   :  { %v180_v63 = vpop.f32.mrf.mxu0  ;;  %v557_v1 = vpop.f32.mrf.mxu1 }
 0x11f   :  { %v181_v2 = vadd.f32 %v180_v63, %v104_v58  ;;  %v255_v0 = vmax.f32 %v250_v61, 0.0  ;;  %v253_v4 = vmax.f32 %v179_v62, 0.0 }
 0x121   :  { %v254_v3 = vmax.f32 %v181_v2, 0.0  ;;  %591 = vmatmul.mubr.f32.vlgmr.msra.gmra.mxu1 %v255_v0 }
 0x123   :  { %321 = vmatprep.mubr.f32.mxu0 %v254_v3 }
 0x124   :  { %322 = vmatmul.mubr.f32.vlgmr.msra.gmra.mxu0 %v253_v4 }
 0x1e1   :  { %v393_v5 = vpop.f32.mrf.mxu1 }
 0x1e3   :  { %v592_v6 = vpop.f32.mrf.mxu1 }
 0x1e4   :  { %v503_v7 = vpop.f32.mrf.mxu0 }
 0x1e6   :  { %v504_v8 = vpop.f32.mrf.mxu0 }
 0x1e7   :  { %v505_v9 = vadd.f32 %v504_v8, %v503_v7 }
 0x1e9   :  { %v394_v10 = vadd.f32 %v505_v9, %v393_v5 }
 0x1eb   :  { %403 = vst [vmem:[#allocation8] sm:$0xff] %v394_v10 }
 0x1ec   :  { %651 = shalt.err (!%p648_p0)
}
 0x1ed   :  { %413 = dma.vmem_to_hbm [thread:$0]  %s411_s24, 128, %s941_s3, [#allocation5]  }
 0x1ee   :  { %664 = dma.done.wait [#allocation5], 128  }
 0x1ef   :  { %665 = vsyncadd [#allocation5], 4294967168 }
 0x1f0   :  { %417 = vsyncpa [#allocation4], 1 }
 0x1f1   :  { %418 = vsyncpa [#allocation7], 1 }
 0x1f2   :  { %419 = vsyncpa [#allocation5], 1 }

</bundles_post_ra>
